<compile_context>
chip_gen: v7x
topology: tpu7x:2x2x1
jax: 0.10.0
libtpu: 0.0.40
codegen_flags: <defaults>
</compile_context>

<pallas_src>
import math

import jax
import jax.numpy as jnp
import numpy as np
from jax import lax
from jax.experimental import pallas as pl
from jax.experimental.pallas import tpu as pltpu


# -----------------------------------------------------------------------------
# Static pooling geometry (identical arithmetic to the PyTorch module).
# -----------------------------------------------------------------------------
def _level_geometry(h, w, num_levels):
    params = []
    for i in range(num_levels):
        level = i + 1
        kernel_size = (math.ceil(h / level), math.ceil(w / level))
        ph = math.floor((kernel_size[0] * level - h + 1) / 2)
        pw = math.floor((kernel_size[1] * level - w + 1) / 2)
        h_new = 2 * ph + h
        w_new = 2 * pw + w
        kh = math.ceil(h_new / level); kw = math.ceil(w_new / level)
        sh = math.floor(h_new / level); sw = math.floor(w_new / level)
        out_h = (h_new - kh) // sh + 1      # F.max_pool2d, padding=0, ceil_mode=False
        out_w = (w_new - kw) // sw + 1
        params.append((kh, kw, sh, sw, ph, pw, out_h, out_w))
    return params


def _round_up(x, m):
    return (x + m - 1) // m * m


# -----------------------------------------------------------------------------
# VMEM-budget / generation-aware lane-tile selection.
# -----------------------------------------------------------------------------
def _vmem_capacity_bytes():
    cap = 64 << 20                           # assume the smallest (v7x) if unknown
    try:
        info = pltpu.get_tpu_info()
        cap = int(getattr(info, "vmem_capacity_bytes", cap))
    except Exception:
        pass
    return cap


def _choose_nc_tile(nc_pad, hw, tbp, itemsize, pool_type):
    cap = _vmem_capacity_bytes()
    budget = max(8 << 20, cap // 4)          # ~16 MiB on v7x, ~32 MiB on v5e/v6e
    if pool_type == 'max_pool':
        # dbl-buffered input block + on-chip transposed copy + dbl-buffered out
        per_lane = 3 * hw * itemsize + 2 * tbp * itemsize + 256
        fixed = 1 << 20
    else:
        # dbl-buffered input block + f32 copy + f32 result + dbl-buffered out
        per_lane = 2 * hw * itemsize + 4 * hw + 4 * tbp + 2 * tbp * itemsize + 256
        fixed = 2 * hw * tbp * 4 + (1 << 20)  # dbl-buffered pooling matrix
    # TODO(synk): for very large H*W where even a 128-lane tile exceeds the v7x
    # budget, add an 'arbitrary' grid axis over H with per-bin VMEM accumulators
    # instead of shrinking the lane tile below 128.
    lane_budget = max(budget - fixed, 128 * per_lane)
    cands = [t for t in range(128, nc_pad + 1, 128) if nc_pad % t == 0]
    fitting = [t for t in cands if t * per_lane <= lane_budget] or [128]
    tile = max(fitting)
    # v7x has two TensorCores: prefer >= 2 (even) grid steps over one huge tile,
    # but never drop below a 128-lane tile.
    if nc_pad // tile < 2:
        multi = [t for t in fitting if nc_pad // t >= 2]
        if multi:
            even = [t for t in multi if (nc_pad // t) % 2 == 0]
            tile = max(even or multi)
    need = fixed + tile * per_lane
    vmem_limit = int(min(cap * 3 // 4, max(2 * need, 16 << 20)))
    return tile, vmem_limit


# -----------------------------------------------------------------------------
# Kernels.
# -----------------------------------------------------------------------------
def _make_max_kernel(h, w, level_params, nc_tile):
    """Fused max-pool pyramid: (nc_tile, H*W) tile -> (tbp, nc_tile) bins."""

    def kernel(x_ref, o_ref):
        # One on-chip transpose puts N*C on the lane axis (lane-dense compute
        # and stores) with no extra HBM traffic.
        xt = x_ref[...].T                                   # (h*w, nc_tile)

        rows = []                 # pending rows, flushed as aligned 8-row stores
        base = 0

        def emit(row):
            nonlocal base
            rows.append(row.astype(o_ref.dtype))
            if len(rows) == 8:
                o_ref[base:base + 8, :] = jnp.concatenate(rows, axis=0)
                base += 8
                rows.clear()

        zero_row = jnp.zeros((1, nc_tile), o_ref.dtype)
        neg_inf = jnp.array(-jnp.inf, xt.dtype)
        col_iota = lax.broadcasted_iota(jnp.int32, (w, nc_tile), 0)  # hoisted

        for (kh, kw, sh, sw, ph, pw, oh, ow) in level_params:
            for p in range(oh):
                r0 = max(0, p * sh - ph)
                r1 = min(h, p * sh - ph + kh)
                if r1 <= r0:                      # window entirely in the padding
                    for _ in range(ow):
                        emit(zero_row)
                    continue
                # H-stage, hoisted out of the q loop: elementwise max over the
                # window's rows at full W width (shared by all ow column bins).
                hred = xt[r0 * w:(r0 + 1) * w, :]            # (w, nc_tile)
                for r in range(r0 + 1, r1):
                    hred = jnp.maximum(hred, xt[r * w:(r + 1) * w, :])
                row_has_pad = (r1 - r0) < kh
                # W-stage: static column mask + sublane reduce (no unaligned
                # sublane slicing).
                for q in range(ow):
                    c0 = max(0, q * sw - pw)
                    c1 = min(w, q * sw - pw + kw)
                    if c1 <= c0:
                        emit(zero_row)
                        continue
                    if c0 == 0 and c1 == w:
                        masked = hred
                    else:
                        colmask = (col_iota >= c0) & (col_iota < c1)
                        masked = jnp.where(colmask, hred, neg_inf)
                    v = jnp.max(masked, axis=0, keepdims=True)   # (1, nc_tile)
                    if row_has_pad or (c1 - c0) < kw:
                        # ZeroPad2d + max_pool: padded zeros take part in the max.
                        v = jnp.maximum(v, jnp.zeros_like(v))
                    emit(v)

        if rows:                                   # final zero-padded 8-row group
            while len(rows) < 8:
                rows.append(zero_row)
            o_ref[base:base + 8, :] = jnp.concatenate(rows, axis=0)

    return kernel


def _make_avg_kernel():
    """Fused avg-pool pyramid as one MXU matmul against the pooling matrix."""

    def kernel(x_ref, w_ref, o_ref):
        x2 = x_ref[...].astype(jnp.float32)                    # (nc_tile, h*w)
        res = jnp.dot(x2, w_ref[...],
                      preferred_element_type=jnp.float32)      # (nc_tile, tbp)
        o_ref[...] = res.T.astype(o_ref.dtype)                 # lane-dense store

    return kernel


def _build_pool_matrix(h, w, level_params, tbp):
    """Static (H*W, tbp) matrix: 1/(kh*kw) over each clamped window, else 0."""
    W = np.zeros((h * w, tbp), np.float32)
    b = 0
    for (kh, kw, sh, sw, ph, pw, oh, ow) in level_params:
        inv = 1.0 / (kh * kw)                    # count_include_pad=True denominator
        for p in range(oh):
            r0 = max(0, p * sh - ph); r1 = min(h, p * sh - ph + kh)
            for q in range(ow):
                c0 = max(0, q * sw - pw); c1 = min(w, q * sw - pw + kw)
                if r1 > r0 and c1 > c0:
                    for r in range(r0, r1):
                        W[r * w + c0:r * w + c1, b] = inv
                b += 1
    return jnp.asarray(W)


# -----------------------------------------------------------------------------
# Wrapper (forward pass).
# -----------------------------------------------------------------------------
def modified_spp_layer(x, num_levels, pool_type='max_pool'):
    """JAX/Pallas port of Modified_SPPLayer.forward. x: (N, C, H, W)."""
    n, c, h, w = x.shape
    nc, hw = n * c, h * w
    itemsize = jnp.dtype(x.dtype).itemsize

    level_params = _level_geometry(h, w, num_levels)
    bins_per_level = [oh * ow for (*_, oh, ow) in level_params]
    total_bins = sum(bins_per_level)
    tbp = _round_up(total_bins, 8)            # pad rows so stores/DMA are unmasked

    # Native-order read: (N, C, H, W) -> (N*C, H*W) is a free reshape, so the
    # kernel reads x from HBM exactly once (no wrapper transpose pass).
    x2 = x.reshape(nc, hw)
    nc_pad = _round_up(nc, 128)               # full 128-lane utilization
    if nc_pad != nc:
        x2 = jnp.pad(x2, ((0, nc_pad - nc), (0, 0)))

    nc_tile, vmem_limit = _choose_nc_tile(nc_pad, hw, tbp, itemsize, pool_type)
    steps = nc_pad // nc_tile

    in_kwargs = dict(pipeline_mode=pl.Buffered(3)) if steps >= 4 else {}
    x_spec = pl.BlockSpec((nc_tile, hw), lambda i: (i, 0), **in_kwargs)
    out_spec = pl.BlockSpec((tbp, nc_tile), lambda i: (0, i))
    out_shape = jax.ShapeDtypeStruct((tbp, nc_pad), x.dtype)
    compiler_params = pltpu.CompilerParams(
        dimension_semantics=("parallel",), vmem_limit_bytes=vmem_limit)

    if pool_type == 'max_pool':
        cost = pl.CostEstimate(
            flops=2 * num_levels * hw * nc_pad,
            transcendentals=0,
            bytes_accessed=(nc_pad * hw + tbp * nc_pad) * itemsize)
        out = pl.pallas_call(
            _make_max_kernel(h, w, level_params, nc_tile),
            out_shape=out_shape,
            grid=(steps,),
            in_specs=[x_spec],
            out_specs=out_spec,
            compiler_params=compiler_params,
            cost_estimate=cost,
        )(x2)
    else:
        pool_mat = _build_pool_matrix(h, w, level_params, tbp)
        w_spec = pl.BlockSpec((hw, tbp), lambda i: (0, 0))
        cost = pl.CostEstimate(
            flops=2 * nc_pad * hw * tbp,
            transcendentals=0,
            bytes_accessed=(nc_pad * hw + tbp * nc_pad) * itemsize
                           + steps * hw * tbp * 4)
        out = pl.pallas_call(
            _make_avg_kernel(),
            out_shape=out_shape,
            grid=(steps,),
            in_specs=[x_spec, w_spec],
            out_specs=out_spec,
            compiler_params=compiler_params,
            cost_estimate=cost,
        )(x2, pool_mat)

    out = out[:total_bins, :nc]               # drop row / lane padding (tiny)

    # Restore the PyTorch flattening order: per sample, per level, (c, p, q).
    pieces, off = [], 0
    for b in bins_per_level:
        slab = out[off:off + b, :].reshape(b, n, c)                  # (bins, N, C)
        pieces.append(jnp.transpose(slab, (1, 2, 0)).reshape(n, c * b))
        off += b
    return jnp.concatenate(pieces, axis=1)    # torch.cat(..., dim=1)


# -----------------------------------------------------------------------------
# Pure-JAX reference (verification only).
# -----------------------------------------------------------------------------
def _reference(x, num_levels, pool_type='max_pool'):
    n, c, h, w = x.shape
    pieces = []
    for (kh, kw, sh, sw, ph, pw, oh, ow) in _level_geometry(h, w, num_levels):
        x_new = jnp.pad(x, ((0, 0), (0, 0), (ph, ph), (pw, pw)))
        if pool_type == 'max_pool':
            t = lax.reduce_window(x_new, -jnp.inf, lax.max,
                                  (1, 1, kh, kw), (1, 1, sh, sw), 'VALID')
        else:
            t = lax.reduce_window(x_new, 0.0, lax.add,
                                  (1, 1, kh, kw), (1, 1, sh, sw), 'VALID') / (kh * kw)
        pieces.append(t.reshape(n, -1))
    return jnp.concatenate(pieces, axis=1)


if __name__ == "__main__":
    key = jax.random.PRNGKey(0)
    x = jax.random.normal(key, (2, 4, 16, 16), dtype=jnp.float32)
    num_levels = 3

    out_max = jax.block_until_ready(modified_spp_layer(x, num_levels, 'max_pool'))
    out_avg = jax.block_until_ready(modified_spp_layer(x, num_levels, 'avg_pool'))

    ref_max = _reference(x, num_levels, 'max_pool')
    ref_avg = _reference(x, num_levels, 'avg_pool')

    expected_cols = 4 * sum((l + 1) ** 2 for l in range(num_levels))
    assert out_max.shape == (2, expected_cols), out_max.shape
    assert out_avg.shape == (2, expected_cols), out_avg.shape
    assert jnp.allclose(out_max, ref_max, atol=1e-6, rtol=1e-6)
    assert jnp.allclose(out_avg, ref_avg, atol=1e-4, rtol=1e-4)

    print("KERNEL_OK")
</pallas_src>

<mosaic_0001>
module attributes {stable_mosaic.version = 11 : i64} {
  func.func @kernel(%arg0: i32, %arg1: memref<128x256xf32, #tpu.memory_space<vmem>>, %arg2: memref<16x128xf32, #tpu.memory_space<vmem>>) attributes {dimension_semantics = [#tpu.dimension_semantics<parallel>], iteration_bounds = array<i64: 1>, scalar_prefetch = 0 : i64, scratch_operands = 0 : i64, tpu.core_type = #tpu.core_type<tc>, window_params = [{transform_indices = @transform_0, window_bounds = array<i64: 128, 256>}, {transform_indices = @transform_1, window_bounds = array<i64: 16, 128>}]} {
    %c0 = arith.constant 0 : index
    %c0_0 = arith.constant 0 : index
    %0 = vector.load %arg1[%c0, %c0_0] : memref<128x256xf32, #tpu.memory_space<vmem>>, vector<128x256xf32>
    %1 = tpu.transpose %0, [1, 0] : vector<128x256xf32> -> vector<256x128xf32>
    %cst = arith.constant 0.000000e+00 : f32
    %2 = vector.broadcast %cst : f32 to vector<1x128xf32>
    %3 = tpu.iota {dimensions = array<i32: 0>} : vector<16x128xi32>
    %4 = vector.extract_strided_slice %1 {offsets = [0, 0], sizes = [16, 128], strides = [1, 1]} : vector<256x128xf32> to vector<16x128xf32>
    %5 = vector.extract_strided_slice %1 {offsets = [16, 0], sizes = [16, 128], strides = [1, 1]} : vector<256x128xf32> to vector<16x128xf32>
    %6 = arith.maximumf %4, %5 : vector<16x128xf32>
    %7 = vector.extract_strided_slice %1 {offsets = [32, 0], sizes = [16, 128], strides = [1, 1]} : vector<256x128xf32> to vector<16x128xf32>
    %8 = arith.maximumf %6, %7 : vector<16x128xf32>
    %9 = vector.extract_strided_slice %1 {offsets = [48, 0], sizes = [16, 128], strides = [1, 1]} : vector<256x128xf32> to vector<16x128xf32>
    %10 = arith.maximumf %8, %9 : vector<16x128xf32>
    %11 = vector.extract_strided_slice %1 {offsets = [64, 0], sizes = [16, 128], strides = [1, 1]} : vector<256x128xf32> to vector<16x128xf32>
    %12 = arith.maximumf %10, %11 : vector<16x128xf32>
    %13 = vector.extract_strided_slice %1 {offsets = [80, 0], sizes = [16, 128], strides = [1, 1]} : vector<256x128xf32> to vector<16x128xf32>
    %14 = arith.maximumf %12, %13 : vector<16x128xf32>
    %15 = vector.extract_strided_slice %1 {offsets = [96, 0], sizes = [16, 128], strides = [1, 1]} : vector<256x128xf32> to vector<16x128xf32>
    %16 = arith.maximumf %14, %15 : vector<16x128xf32>
    %17 = vector.extract_strided_slice %1 {offsets = [112, 0], sizes = [16, 128], strides = [1, 1]} : vector<256x128xf32> to vector<16x128xf32>
    %18 = arith.maximumf %16, %17 : vector<16x128xf32>
    %19 = vector.extract_strided_slice %1 {offsets = [128, 0], sizes = [16, 128], strides = [1, 1]} : vector<256x128xf32> to vector<16x128xf32>
    %20 = arith.maximumf %18, %19 : vector<16x128xf32>
    %21 = vector.extract_strided_slice %1 {offsets = [144, 0], sizes = [16, 128], strides = [1, 1]} : vector<256x128xf32> to vector<16x128xf32>
    %22 = arith.maximumf %20, %21 : vector<16x128xf32>
    %23 = vector.extract_strided_slice %1 {offsets = [160, 0], sizes = [16, 128], strides = [1, 1]} : vector<256x128xf32> to vector<16x128xf32>
    %24 = arith.maximumf %22, %23 : vector<16x128xf32>
    %25 = vector.extract_strided_slice %1 {offsets = [176, 0], sizes = [16, 128], strides = [1, 1]} : vector<256x128xf32> to vector<16x128xf32>
    %26 = arith.maximumf %24, %25 : vector<16x128xf32>
    %27 = vector.extract_strided_slice %1 {offsets = [192, 0], sizes = [16, 128], strides = [1, 1]} : vector<256x128xf32> to vector<16x128xf32>
    %28 = arith.maximumf %26, %27 : vector<16x128xf32>
    %29 = vector.extract_strided_slice %1 {offsets = [208, 0], sizes = [16, 128], strides = [1, 1]} : vector<256x128xf32> to vector<16x128xf32>
    %30 = arith.maximumf %28, %29 : vector<16x128xf32>
    %31 = vector.extract_strided_slice %1 {offsets = [224, 0], sizes = [16, 128], strides = [1, 1]} : vector<256x128xf32> to vector<16x128xf32>
    %32 = arith.maximumf %30, %31 : vector<16x128xf32>
    %33 = vector.extract_strided_slice %1 {offsets = [240, 0], sizes = [16, 128], strides = [1, 1]} : vector<256x128xf32> to vector<16x128xf32>
    %34 = arith.maximumf %32, %33 : vector<16x128xf32>
    %cst_1 = arith.constant dense<0xFF800000> : vector<128xf32>
    %35 = vector.multi_reduction <maximumf>, %34, %cst_1 [0] : vector<16x128xf32> to vector<128xf32>
    %36 = vector.shape_cast %35 : vector<128xf32> to vector<1x128xf32>
    %37 = vector.extract_strided_slice %1 {offsets = [0, 0], sizes = [16, 128], strides = [1, 1]} : vector<256x128xf32> to vector<16x128xf32>
    %38 = vector.extract_strided_slice %1 {offsets = [16, 0], sizes = [16, 128], strides = [1, 1]} : vector<256x128xf32> to vector<16x128xf32>
    %39 = arith.maximumf %37, %38 : vector<16x128xf32>
    %40 = vector.extract_strided_slice %1 {offsets = [32, 0], sizes = [16, 128], strides = [1, 1]} : vector<256x128xf32> to vector<16x128xf32>
    %41 = arith.maximumf %39, %40 : vector<16x128xf32>
    %42 = vector.extract_strided_slice %1 {offsets = [48, 0], sizes = [16, 128], strides = [1, 1]} : vector<256x128xf32> to vector<16x128xf32>
    %43 = arith.maximumf %41, %42 : vector<16x128xf32>
    %44 = vector.extract_strided_slice %1 {offsets = [64, 0], sizes = [16, 128], strides = [1, 1]} : vector<256x128xf32> to vector<16x128xf32>
    %45 = arith.maximumf %43, %44 : vector<16x128xf32>
    %46 = vector.extract_strided_slice %1 {offsets = [80, 0], sizes = [16, 128], strides = [1, 1]} : vector<256x128xf32> to vector<16x128xf32>
    %47 = arith.maximumf %45, %46 : vector<16x128xf32>
    %48 = vector.extract_strided_slice %1 {offsets = [96, 0], sizes = [16, 128], strides = [1, 1]} : vector<256x128xf32> to vector<16x128xf32>
    %49 = arith.maximumf %47, %48 : vector<16x128xf32>
    %50 = vector.extract_strided_slice %1 {offsets = [112, 0], sizes = [16, 128], strides = [1, 1]} : vector<256x128xf32> to vector<16x128xf32>
    %51 = arith.maximumf %49, %50 : vector<16x128xf32>
    %c0_i32 = arith.constant 0 : i32
    %52 = vector.broadcast %c0_i32 : i32 to vector<16x128xi32>
    %53 = arith.cmpi sge, %3, %52 : vector<16x128xi32>
    %c8_i32 = arith.constant 8 : i32
    %54 = vector.broadcast %c8_i32 : i32 to vector<16x128xi32>
    %55 = arith.cmpi slt, %3, %54 : vector<16x128xi32>
    %56 = arith.andi %53, %55 : vector<16x128xi1>
    %cst_2 = arith.constant 0xFF800000 : f32
    %57 = vector.broadcast %cst_2 : f32 to vector<16x128xf32>
    %58 = arith.select %56, %51, %57 : vector<16x128xi1>, vector<16x128xf32>
    %cst_3 = arith.constant dense<0xFF800000> : vector<128xf32>
    %59 = vector.multi_reduction <maximumf>, %58, %cst_3 [0] : vector<16x128xf32> to vector<128xf32>
    %60 = vector.shape_cast %59 : vector<128xf32> to vector<1x128xf32>
    %c8_i32_4 = arith.constant 8 : i32
    %61 = vector.broadcast %c8_i32_4 : i32 to vector<16x128xi32>
    %62 = arith.cmpi sge, %3, %61 : vector<16x128xi32>
    %c16_i32 = arith.constant 16 : i32
    %63 = vector.broadcast %c16_i32 : i32 to vector<16x128xi32>
    %64 = arith.cmpi slt, %3, %63 : vector<16x128xi32>
    %65 = arith.andi %62, %64 : vector<16x128xi1>
    %cst_5 = arith.constant 0xFF800000 : f32
    %66 = vector.broadcast %cst_5 : f32 to vector<16x128xf32>
    %67 = arith.select %65, %51, %66 : vector<16x128xi1>, vector<16x128xf32>
    %cst_6 = arith.constant dense<0xFF800000> : vector<128xf32>
    %68 = vector.multi_reduction <maximumf>, %67, %cst_6 [0] : vector<16x128xf32> to vector<128xf32>
    %69 = vector.shape_cast %68 : vector<128xf32> to vector<1x128xf32>
    %70 = vector.extract_strided_slice %1 {offsets = [128, 0], sizes = [16, 128], strides = [1, 1]} : vector<256x128xf32> to vector<16x128xf32>
    %71 = vector.extract_strided_slice %1 {offsets = [144, 0], sizes = [16, 128], strides = [1, 1]} : vector<256x128xf32> to vector<16x128xf32>
    %72 = arith.maximumf %70, %71 : vector<16x128xf32>
    %73 = vector.extract_strided_slice %1 {offsets = [160, 0], sizes = [16, 128], strides = [1, 1]} : vector<256x128xf32> to vector<16x128xf32>
    %74 = arith.maximumf %72, %73 : vector<16x128xf32>
    %75 = vector.extract_strided_slice %1 {offsets = [176, 0], sizes = [16, 128], strides = [1, 1]} : vector<256x128xf32> to vector<16x128xf32>
    %76 = arith.maximumf %74, %75 : vector<16x128xf32>
    %77 = vector.extract_strided_slice %1 {offsets = [192, 0], sizes = [16, 128], strides = [1, 1]} : vector<256x128xf32> to vector<16x128xf32>
    %78 = arith.maximumf %76, %77 : vector<16x128xf32>
    %79 = vector.extract_strided_slice %1 {offsets = [208, 0], sizes = [16, 128], strides = [1, 1]} : vector<256x128xf32> to vector<16x128xf32>
    %80 = arith.maximumf %78, %79 : vector<16x128xf32>
    %81 = vector.extract_strided_slice %1 {offsets = [224, 0], sizes = [16, 128], strides = [1, 1]} : vector<256x128xf32> to vector<16x128xf32>
    %82 = arith.maximumf %80, %81 : vector<16x128xf32>
    %83 = vector.extract_strided_slice %1 {offsets = [240, 0], sizes = [16, 128], strides = [1, 1]} : vector<256x128xf32> to vector<16x128xf32>
    %84 = arith.maximumf %82, %83 : vector<16x128xf32>
    %c0_i32_7 = arith.constant 0 : i32
    %85 = vector.broadcast %c0_i32_7 : i32 to vector<16x128xi32>
    %86 = arith.cmpi sge, %3, %85 : vector<16x128xi32>
    %c8_i32_8 = arith.constant 8 : i32
    %87 = vector.broadcast %c8_i32_8 : i32 to vector<16x128xi32>
    %88 = arith.cmpi slt, %3, %87 : vector<16x128xi32>
    %89 = arith.andi %86, %88 : vector<16x128xi1>
    %cst_9 = arith.constant 0xFF800000 : f32
    %90 = vector.broadcast %cst_9 : f32 to vector<16x128xf32>
    %91 = arith.select %89, %84, %90 : vector<16x128xi1>, vector<16x128xf32>
    %cst_10 = arith.constant dense<0xFF800000> : vector<128xf32>
    %92 = vector.multi_reduction <maximumf>, %91, %cst_10 [0] : vector<16x128xf32> to vector<128xf32>
    %93 = vector.shape_cast %92 : vector<128xf32> to vector<1x128xf32>
    %c8_i32_11 = arith.constant 8 : i32
    %94 = vector.broadcast %c8_i32_11 : i32 to vector<16x128xi32>
    %95 = arith.cmpi sge, %3, %94 : vector<16x128xi32>
    %c16_i32_12 = arith.constant 16 : i32
    %96 = vector.broadcast %c16_i32_12 : i32 to vector<16x128xi32>
    %97 = arith.cmpi slt, %3, %96 : vector<16x128xi32>
    %98 = arith.andi %95, %97 : vector<16x128xi1>
    %cst_13 = arith.constant 0xFF800000 : f32
    %99 = vector.broadcast %cst_13 : f32 to vector<16x128xf32>
    %100 = arith.select %98, %84, %99 : vector<16x128xi1>, vector<16x128xf32>
    %cst_14 = arith.constant dense<0xFF800000> : vector<128xf32>
    %101 = vector.multi_reduction <maximumf>, %100, %cst_14 [0] : vector<16x128xf32> to vector<128xf32>
    %102 = vector.shape_cast %101 : vector<128xf32> to vector<1x128xf32>
    %103 = vector.extract_strided_slice %1 {offsets = [0, 0], sizes = [16, 128], strides = [1, 1]} : vector<256x128xf32> to vector<16x128xf32>
    %104 = vector.extract_strided_slice %1 {offsets = [16, 0], sizes = [16, 128], strides = [1, 1]} : vector<256x128xf32> to vector<16x128xf32>
    %105 = arith.maximumf %103, %104 : vector<16x128xf32>
    %106 = vector.extract_strided_slice %1 {offsets = [32, 0], sizes = [16, 128], strides = [1, 1]} : vector<256x128xf32> to vector<16x128xf32>
    %107 = arith.maximumf %105, %106 : vector<16x128xf32>
    %108 = vector.extract_strided_slice %1 {offsets = [48, 0], sizes = [16, 128], strides = [1, 1]} : vector<256x128xf32> to vector<16x128xf32>
    %109 = arith.maximumf %107, %108 : vector<16x128xf32>
    %110 = vector.extract_strided_slice %1 {offsets = [64, 0], sizes = [16, 128], strides = [1, 1]} : vector<256x128xf32> to vector<16x128xf32>
    %111 = arith.maximumf %109, %110 : vector<16x128xf32>
    %c0_i32_15 = arith.constant 0 : i32
    %112 = vector.broadcast %c0_i32_15 : i32 to vector<16x128xi32>
    %113 = arith.cmpi sge, %3, %112 : vector<16x128xi32>
    %c5_i32 = arith.constant 5 : i32
    %114 = vector.broadcast %c5_i32 : i32 to vector<16x128xi32>
    %115 = arith.cmpi slt, %3, %114 : vector<16x128xi32>
    %116 = arith.andi %113, %115 : vector<16x128xi1>
    %cst_16 = arith.constant 0xFF800000 : f32
    %117 = vector.broadcast %cst_16 : f32 to vector<16x128xf32>
    %118 = arith.select %116, %111, %117 : vector<16x128xi1>, vector<16x128xf32>
    %cst_17 = arith.constant dense<0xFF800000> : vector<128xf32>
    %119 = vector.multi_reduction <maximumf>, %118, %cst_17 [0] : vector<16x128xf32> to vector<128xf32>
    %120 = vector.shape_cast %119 : vector<128xf32> to vector<1x128xf32>
    %cst_18 = arith.constant 0.000000e+00 : f32
    %121 = vector.broadcast %cst_18 : f32 to vector<1x128xf32>
    %122 = arith.maximumf %120, %121 : vector<1x128xf32>
    %c5_i32_19 = arith.constant 5 : i32
    %123 = vector.broadcast %c5_i32_19 : i32 to vector<16x128xi32>
    %124 = arith.cmpi sge, %3, %123 : vector<16x128xi32>
    %c11_i32 = arith.constant 11 : i32
    %125 = vector.broadcast %c11_i32 : i32 to vector<16x128xi32>
    %126 = arith.cmpi slt, %3, %125 : vector<16x128xi32>
    %127 = arith.andi %124, %126 : vector<16x128xi1>
    %cst_20 = arith.constant 0xFF800000 : f32
    %128 = vector.broadcast %cst_20 : f32 to vector<16x128xf32>
    %129 = arith.select %127, %111, %128 : vector<16x128xi1>, vector<16x128xf32>
    %cst_21 = arith.constant dense<0xFF800000> : vector<128xf32>
    %130 = vector.multi_reduction <maximumf>, %129, %cst_21 [0] : vector<16x128xf32> to vector<128xf32>
    %131 = vector.shape_cast %130 : vector<128xf32> to vector<1x128xf32>
    %cst_22 = arith.constant 0.000000e+00 : f32
    %132 = vector.broadcast %cst_22 : f32 to vector<1x128xf32>
    %133 = arith.maximumf %131, %132 : vector<1x128xf32>
    %c11_i32_23 = arith.constant 11 : i32
    %134 = vector.broadcast %c11_i32_23 : i32 to vector<16x128xi32>
    %135 = arith.cmpi sge, %3, %134 : vector<16x128xi32>
    %c16_i32_24 = arith.constant 16 : i32
    %136 = vector.broadcast %c16_i32_24 : i32 to vector<16x128xi32>
    %137 = arith.cmpi slt, %3, %136 : vector<16x128xi32>
    %138 = arith.andi %135, %137 : vector<16x128xi1>
    %cst_25 = arith.constant 0xFF800000 : f32
    %139 = vector.broadcast %cst_25 : f32 to vector<16x128xf32>
    %140 = arith.select %138, %111, %139 : vector<16x128xi1>, vector<16x128xf32>
    %cst_26 = arith.constant dense<0xFF800000> : vector<128xf32>
    %141 = vector.multi_reduction <maximumf>, %140, %cst_26 [0] : vector<16x128xf32> to vector<128xf32>
    %142 = vector.shape_cast %141 : vector<128xf32> to vector<1x128xf32>
    %cst_27 = arith.constant 0.000000e+00 : f32
    %143 = vector.broadcast %cst_27 : f32 to vector<1x128xf32>
    %144 = arith.maximumf %142, %143 : vector<1x128xf32>
    %145 = tpu.concatenate %36, %60, %69, %93, %102, %122, %133, %144 in 0 : vector<1x128xf32>, vector<1x128xf32>, vector<1x128xf32>, vector<1x128xf32>, vector<1x128xf32>, vector<1x128xf32>, vector<1x128xf32>, vector<1x128xf32> -> vector<8x128xf32>
    %c0_28 = arith.constant 0 : index
    %c0_29 = arith.constant 0 : index
    %146 = vector.load %arg2[%c0_28, %c0_29] : memref<16x128xf32, #tpu.memory_space<vmem>>, vector<8x128xf32>
    tpu.vector_store %arg2[%c0_28, %c0_29], %145 {strides = array<i32>} : memref<16x128xf32, #tpu.memory_space<vmem>>, vector<8x128xf32>,
    %147 = vector.extract_strided_slice %1 {offsets = [80, 0], sizes = [16, 128], strides = [1, 1]} : vector<256x128xf32> to vector<16x128xf32>
    %148 = vector.extract_strided_slice %1 {offsets = [96, 0], sizes = [16, 128], strides = [1, 1]} : vector<256x128xf32> to vector<16x128xf32>
    %149 = arith.maximumf %147, %148 : vector<16x128xf32>
    %150 = vector.extract_strided_slice %1 {offsets = [112, 0], sizes = [16, 128], strides = [1, 1]} : vector<256x128xf32> to vector<16x128xf32>
    %151 = arith.maximumf %149, %150 : vector<16x128xf32>
    %152 = vector.extract_strided_slice %1 {offsets = [128, 0], sizes = [16, 128], strides = [1, 1]} : vector<256x128xf32> to vector<16x128xf32>
    %153 = arith.maximumf %151, %152 : vector<16x128xf32>
    %154 = vector.extract_strided_slice %1 {offsets = [144, 0], sizes = [16, 128], strides = [1, 1]} : vector<256x128xf32> to vector<16x128xf32>
    %155 = arith.maximumf %153, %154 : vector<16x128xf32>
    %156 = vector.extract_strided_slice %1 {offsets = [160, 0], sizes = [16, 128], strides = [1, 1]} : vector<256x128xf32> to vector<16x128xf32>
    %157 = arith.maximumf %155, %156 : vector<16x128xf32>
    %c0_i32_30 = arith.constant 0 : i32
    %158 = vector.broadcast %c0_i32_30 : i32 to vector<16x128xi32>
    %159 = arith.cmpi sge, %3, %158 : vector<16x128xi32>
    %c5_i32_31 = arith.constant 5 : i32
    %160 = vector.broadcast %c5_i32_31 : i32 to vector<16x128xi32>
    %161 = arith.cmpi slt, %3, %160 : vector<16x128xi32>
    %162 = arith.andi %159, %161 : vector<16x128xi1>
    %cst_32 = arith.constant 0xFF800000 : f32
    %163 = vector.broadcast %cst_32 : f32 to vector<16x128xf32>
    %164 = arith.select %162, %157, %163 : vector<16x128xi1>, vector<16x128xf32>
    %cst_33 = arith.constant dense<0xFF800000> : vector<128xf32>
    %165 = vector.multi_reduction <maximumf>, %164, %cst_33 [0] : vector<16x128xf32> to vector<128xf32>
    %166 = vector.shape_cast %165 : vector<128xf32> to vector<1x128xf32>
    %cst_34 = arith.constant 0.000000e+00 : f32
    %167 = vector.broadcast %cst_34 : f32 to vector<1x128xf32>
    %168 = arith.maximumf %166, %167 : vector<1x128xf32>
    %c5_i32_35 = arith.constant 5 : i32
    %169 = vector.broadcast %c5_i32_35 : i32 to vector<16x128xi32>
    %170 = arith.cmpi sge, %3, %169 : vector<16x128xi32>
    %c11_i32_36 = arith.constant 11 : i32
    %171 = vector.broadcast %c11_i32_36 : i32 to vector<16x128xi32>
    %172 = arith.cmpi slt, %3, %171 : vector<16x128xi32>
    %173 = arith.andi %170, %172 : vector<16x128xi1>
    %cst_37 = arith.constant 0xFF800000 : f32
    %174 = vector.broadcast %cst_37 : f32 to vector<16x128xf32>
    %175 = arith.select %173, %157, %174 : vector<16x128xi1>, vector<16x128xf32>
    %cst_38 = arith.constant dense<0xFF800000> : vector<128xf32>
    %176 = vector.multi_reduction <maximumf>, %175, %cst_38 [0] : vector<16x128xf32> to vector<128xf32>
    %177 = vector.shape_cast %176 : vector<128xf32> to vector<1x128xf32>
    %c11_i32_39 = arith.constant 11 : i32
    %178 = vector.broadcast %c11_i32_39 : i32 to vector<16x128xi32>
    %179 = arith.cmpi sge, %3, %178 : vector<16x128xi32>
    %c16_i32_40 = arith.constant 16 : i32
    %180 = vector.broadcast %c16_i32_40 : i32 to vector<16x128xi32>
    %181 = arith.cmpi slt, %3, %180 : vector<16x128xi32>
    %182 = arith.andi %179, %181 : vector<16x128xi1>
    %cst_41 = arith.constant 0xFF800000 : f32
    %183 = vector.broadcast %cst_41 : f32 to vector<16x128xf32>
    %184 = arith.select %182, %157, %183 : vector<16x128xi1>, vector<16x128xf32>
    %cst_42 = arith.constant dense<0xFF800000> : vector<128xf32>
    %185 = vector.multi_reduction <maximumf>, %184, %cst_42 [0] : vector<16x128xf32> to vector<128xf32>
    %186 = vector.shape_cast %185 : vector<128xf32> to vector<1x128xf32>
    %cst_43 = arith.constant 0.000000e+00 : f32
    %187 = vector.broadcast %cst_43 : f32 to vector<1x128xf32>
    %188 = arith.maximumf %186, %187 : vector<1x128xf32>
    %189 = vector.extract_strided_slice %1 {offsets = [176, 0], sizes = [16, 128], strides = [1, 1]} : vector<256x128xf32> to vector<16x128xf32>
    %190 = vector.extract_strided_slice %1 {offsets = [192, 0], sizes = [16, 128], strides = [1, 1]} : vector<256x128xf32> to vector<16x128xf32>
    %191 = arith.maximumf %189, %190 : vector<16x128xf32>
    %192 = vector.extract_strided_slice %1 {offsets = [208, 0], sizes = [16, 128], strides = [1, 1]} : vector<256x128xf32> to vector<16x128xf32>
    %193 = arith.maximumf %191, %192 : vector<16x128xf32>
    %194 = vector.extract_strided_slice %1 {offsets = [224, 0], sizes = [16, 128], strides = [1, 1]} : vector<256x128xf32> to vector<16x128xf32>
    %195 = arith.maximumf %193, %194 : vector<16x128xf32>
    %196 = vector.extract_strided_slice %1 {offsets = [240, 0], sizes = [16, 128], strides = [1, 1]} : vector<256x128xf32> to vector<16x128xf32>
    %197 = arith.maximumf %195, %196 : vector<16x128xf32>
    %c0_i32_44 = arith.constant 0 : i32
    %198 = vector.broadcast %c0_i32_44 : i32 to vector<16x128xi32>
    %199 = arith.cmpi sge, %3, %198 : vector<16x128xi32>
    %c5_i32_45 = arith.constant 5 : i32
    %200 = vector.broadcast %c5_i32_45 : i32 to vector<16x128xi32>
    %201 = arith.cmpi slt, %3, %200 : vector<16x128xi32>
    %202 = arith.andi %199, %201 : vector<16x128xi1>
    %cst_46 = arith.constant 0xFF800000 : f32
    %203 = vector.broadcast %cst_46 : f32 to vector<16x128xf32>
    %204 = arith.select %202, %197, %203 : vector<16x128xi1>, vector<16x128xf32>
    %cst_47 = arith.constant dense<0xFF800000> : vector<128xf32>
    %205 = vector.multi_reduction <maximumf>, %204, %cst_47 [0] : vector<16x128xf32> to vector<128xf32>
    %206 = vector.shape_cast %205 : vector<128xf32> to vector<1x128xf32>
    %cst_48 = arith.constant 0.000000e+00 : f32
    %207 = vector.broadcast %cst_48 : f32 to vector<1x128xf32>
    %208 = arith.maximumf %206, %207 : vector<1x128xf32>
    %c5_i32_49 = arith.constant 5 : i32
    %209 = vector.broadcast %c5_i32_49 : i32 to vector<16x128xi32>
    %210 = arith.cmpi sge, %3, %209 : vector<16x128xi32>
    %c11_i32_50 = arith.constant 11 : i32
    %211 = vector.broadcast %c11_i32_50 : i32 to vector<16x128xi32>
    %212 = arith.cmpi slt, %3, %211 : vector<16x128xi32>
    %213 = arith.andi %210, %212 : vector<16x128xi1>
    %cst_51 = arith.constant 0xFF800000 : f32
    %214 = vector.broadcast %cst_51 : f32 to vector<16x128xf32>
    %215 = arith.select %213, %197, %214 : vector<16x128xi1>, vector<16x128xf32>
    %cst_52 = arith.constant dense<0xFF800000> : vector<128xf32>
    %216 = vector.multi_reduction <maximumf>, %215, %cst_52 [0] : vector<16x128xf32> to vector<128xf32>
    %217 = vector.shape_cast %216 : vector<128xf32> to vector<1x128xf32>
    %cst_53 = arith.constant 0.000000e+00 : f32
    %218 = vector.broadcast %cst_53 : f32 to vector<1x128xf32>
    %219 = arith.maximumf %217, %218 : vector<1x128xf32>
    %c11_i32_54 = arith.constant 11 : i32
    %220 = vector.broadcast %c11_i32_54 : i32 to vector<16x128xi32>
    %221 = arith.cmpi sge, %3, %220 : vector<16x128xi32>
    %c16_i32_55 = arith.constant 16 : i32
    %222 = vector.broadcast %c16_i32_55 : i32 to vector<16x128xi32>
    %223 = arith.cmpi slt, %3, %222 : vector<16x128xi32>
    %224 = arith.andi %221, %223 : vector<16x128xi1>
    %cst_56 = arith.constant 0xFF800000 : f32
    %225 = vector.broadcast %cst_56 : f32 to vector<16x128xf32>
    %226 = arith.select %224, %197, %225 : vector<16x128xi1>, vector<16x128xf32>
    %cst_57 = arith.constant dense<0xFF800000> : vector<128xf32>
    %227 = vector.multi_reduction <maximumf>, %226, %cst_57 [0] : vector<16x128xf32> to vector<128xf32>
    %228 = vector.shape_cast %227 : vector<128xf32> to vector<1x128xf32>
    %cst_58 = arith.constant 0.000000e+00 : f32
    %229 = vector.broadcast %cst_58 : f32 to vector<1x128xf32>
    %230 = arith.maximumf %228, %229 : vector<1x128xf32>
    %231 = tpu.concatenate %168, %177, %188, %208, %219, %230, %2, %2 in 0 : vector<1x128xf32>, vector<1x128xf32>, vector<1x128xf32>, vector<1x128xf32>, vector<1x128xf32>, vector<1x128xf32>, vector<1x128xf32>, vector<1x128xf32> -> vector<8x128xf32>
    %c8 = arith.constant 8 : index
    %c0_59 = arith.constant 0 : index
    %232 = vector.load %arg2[%c8, %c0_59] : memref<16x128xf32, #tpu.memory_space<vmem>>, vector<8x128xf32>
    tpu.vector_store %arg2[%c8, %c0_59], %231 {strides = array<i32>} : memref<16x128xf32, #tpu.memory_space<vmem>>, vector<8x128xf32>,
    return
  }
  func.func @transform_0(%arg0: i32) -> (i32, i32) {
    %c0_i32 = arith.constant 0 : i32
    %c0_i32_0 = arith.constant 0 : i32
    return %arg0, %c0_i32 : i32, i32
  }
  func.func @transform_1(%arg0: i32) -> (i32, i32) {
    %c0_i32 = arith.constant 0 : i32
    %c0_i32_0 = arith.constant 0 : i32
    return %c0_i32, %arg0 : i32, i32
  }
}

</mosaic_0001>

<bundles_post_ra>
// kernel: tpu_custom_call.1
= control target key start
LH: loop header
LB: loop body
LE: loop exit
PB: predicated region body
PF: predicated region fallthrough
CT: control target
= control target key end

     0   :  { %6 = vsyncpa [#allocation3], 0  ;;  %s571_s0 = inlined_call_operand.hbm [shape: f32[128,256], index: 0, kind: input, shape index: {}]   ;;  %s572_s1 = inlined_call_operand.hbm [shape: f32[16,128], index: 1, kind: output, shape index: {}]  }
   0x1   :  { %7 = vsyncpa [#allocation4], 0  ;;  %s436_s6 = smov [#allocation2]   ;;  %s388_s10 = scalar_lea.hbm %s571_s0, 4096 }
   0x2   :  { %s13_s7 = sshll.u32 %s436_s6, 4  ;;  %p389_p0 = scmp.ne.s32.totalorder %s571_s0, %s388_s10  ;;  %s14_s7 = int_to_ptr.vmem [resolvable:$true] %s13_s7 }
   0x3   :  { %p392_p1 = scmp.lt.u32.totalorder %s388_s10, %s571_s0 }
   0x5   :  { %p394_p2 = pnand %p392_p1, %p389_p0 }
   0x7   :  { %397 = shalt.err (!%p394_p2)
}
   0x8   :  { %s398_s15 = scalar_lea.vmem %s14_s7, 4096  ;;  %p403_p4 = scmp.lt.s32.totalorder %s14_s7, %s14_s7 }
   0x9   :  { %p399_p3 = scmp.ne.s32.totalorder %s14_s7, %s398_s15  ;;  %p404_p5 = scmp.lt.s32.totalorder %s398_s15, %s398_s15 }
   0xb   :  { %p405_p6 = por %p404_p5, %p403_p4 }
   0xd   :  { %p406_p7 = pnand %p405_p6, %p399_p3 }
   0xf   :  { %409 = shalt.err (!%p406_p7)
}
  0x10   :  { %s437_s16 = smov 256   ;;  %s438_s17 = smov 16  }
  0x11   :  { %19 = dma.hbm_to_vmem [thread:$0]  %s571_s0, 4096, %s14_s7, [#allocation3], %s437_s16, %s437_s16, %s438_s17  }
  0x12   :  { %432 = dma.done.wait [#allocation3], 4096  }
  0x13   :  { %433 = vsyncadd [#allocation3], 4294963200  ;;  %v24_v0 = vld [vmem:[#allocation2 + $0x8] sm:$0xff]  ;;  %v23_v1 = vld [vmem:[#allocation2] sm:$0xff]  ;;  %v119_v53 = vlaneseq  ;;  %vm265_vm4 = vcmask 1040384   ;;  %vm267_vm5 = vcmask 1041408  }
  0x14   :  { %87 = vxpose.xlu1.b32.start [1/16] %v24_v0, 128  ;;  %55 = vxpose.xlu0.b32.start [1/16] %v23_v1, 128  ;;  %v26_v2 = vld [vmem:[#allocation2 + $0x18] sm:$0xff]  ;;  %v25_v3 = vld [vmem:[#allocation2 + $0x10] sm:$0xff]  ;;  %v28_v4 = vld [vmem:[#allocation2 + $0x28] sm:$0xff]  ;;  %vm269_vm6 = vcmask 1042432   ;;  %vm271_vm7 = vcmask 1043456   ;;  %vm273_vm8 = vcmask 1044480  }
  0x15   :  { %v27_v5 = vld [vmem:[#allocation2 + $0x20] sm:$0xff]  ;;  %v30_v6 = vld [vmem:[#allocation2 + $0x38] sm:$0xff]  ;;  %v29_v7 = vld [vmem:[#allocation2 + $0x30] sm:$0xff]  ;;  %v486_v61 = vshrl.u32 %v119_v53, 7  ;;  %vm275_vm9 = vcmask 1045504   ;;  %vm277_vm10 = vcmask 1046528  }
  0x16   :  { %v32_v8 = vld [vmem:[#allocation2 + $0x48] sm:$0xff]  ;;  %v31_v9 = vld [vmem:[#allocation2 + $0x40] sm:$0xff]  ;;  %v34_v10 = vld [vmem:[#allocation2 + $0x58] sm:$0xff]  ;;  %s439_s0 = smov [#allocation5]  }
  0x17   :  { %v33_v11 = vld [vmem:[#allocation2 + $0x50] sm:$0xff]  ;;  %v36_v12 = vld [vmem:[#allocation2 + $0x68] sm:$0xff]  ;;  %v35_v13 = vld [vmem:[#allocation2 + $0x60] sm:$0xff]  ;;  %vm221_vm0 = vcmp.lt.s32.totalorder %v486_v61, 5  ;;  %vm235_vm2 = vcmp.ge.s32.totalorder %v486_v61, 5  ;;  %s370_s20 = sshll.u32 %s439_s0, 4  ;;  %s371_s20 = int_to_ptr.vmem [resolvable:$true] %s370_s20 }
  0x18   :  { %88 = vxpose.xlu1.b32.cont [2/16] %v26_v2, 128  ;;  %56 = vxpose.xlu0.b32.cont [2/16] %v25_v3, 128  ;;  %v38_v14 = vld [vmem:[#allocation2 + $0x78] sm:$0xff]  ;;  %v37_v15 = vld [vmem:[#allocation2 + $0x70] sm:$0xff]  ;;  %v40_v16 = vld [vmem:[#allocation2 + $0x88] sm:$0xff]  ;;  %v490_v3 = vadd.s32 8, %v486_v61  ;;  %s410_s21 = scalar_lea.vmem %s371_s20, 256  ;;  %p415_p9 = scmp.lt.s32.totalorder %s371_s20, %s371_s20 }
  0x19   :  { %v39_v17 = vld [vmem:[#allocation2 + $0x80] sm:$0xff]  ;;  %v42_v18 = vld [vmem:[#allocation2 + $0x98] sm:$0xff]  ;;  %v41_v19 = vld [vmem:[#allocation2 + $0x90] sm:$0xff]  ;;  %p411_p8 = scmp.ne.s32.totalorder %s371_s20, %s410_s21  ;;  %p416_p10 = scmp.lt.s32.totalorder %s410_s21, %s410_s21 }
  0x1a   :  { %v44_v20 = vld [vmem:[#allocation2 + $0xa8] sm:$0xff]  ;;  %v43_v21 = vld [vmem:[#allocation2 + $0xa0] sm:$0xff]  ;;  %v46_v22 = vld [vmem:[#allocation2 + $0xb8] sm:$0xff]  ;;  %vm238_vm1 = vcmp.lt.s32.totalorder %v490_v3, 11  ;;  %vm252_vm3 = vcmp.ge.s32.totalorder %v490_v3, 11 }
  0x1b   :  { %v45_v23 = vld [vmem:[#allocation2 + $0xb0] sm:$0xff]  ;;  %v48_v24 = vld [vmem:[#allocation2 + $0xc8] sm:$0xff]  ;;  %v47_v25 = vld [vmem:[#allocation2 + $0xc0] sm:$0xff]  ;;  %p417_p11 = por %p416_p10, %p415_p9 }
  0x1c   :  { %89 = vxpose.xlu1.b32.cont [3/16] %v28_v4, 128  ;;  %57 = vxpose.xlu0.b32.cont [3/16] %v27_v5, 128  ;;  %v50_v26 = vld [vmem:[#allocation2 + $0xd8] sm:$0xff]  ;;  %v49_v27 = vld [vmem:[#allocation2 + $0xd0] sm:$0xff]  ;;  %v52_v28 = vld [vmem:[#allocation2 + $0xe8] sm:$0xff] }
  0x1d   :  { %v51_v29 = vld [vmem:[#allocation2 + $0xe0] sm:$0xff]  ;;  %v54_v30 = vld [vmem:[#allocation2 + $0xf8] sm:$0xff]  ;;  %v53_v31 = vld [vmem:[#allocation2 + $0xf0] sm:$0xff]  ;;  %p418_p12 = pnand %p417_p11, %p411_p8 }
  0x20   :  { %90 = vxpose.xlu1.b32.cont [4/16] %v30_v6, 128  ;;  %58 = vxpose.xlu0.b32.cont [4/16] %v29_v7, 128 }
  0x24   :  { %91 = vxpose.xlu1.b32.cont [5/16] %v32_v8, 128  ;;  %59 = vxpose.xlu0.b32.cont [5/16] %v31_v9, 128 }
  0x28   :  { %92 = vxpose.xlu1.b32.cont [6/16] %v34_v10, 128  ;;  %60 = vxpose.xlu0.b32.cont [6/16] %v33_v11, 128 }
  0x2c   :  { %93 = vxpose.xlu1.b32.cont [7/16] %v36_v12, 128  ;;  %61 = vxpose.xlu0.b32.cont [7/16] %v35_v13, 128 }
  0x30   :  { %94 = vxpose.xlu1.b32.cont [8/16] %v38_v14, 128  ;;  %62 = vxpose.xlu0.b32.cont [8/16] %v37_v15, 128 }
  0x34   :  { %95 = vxpose.xlu1.b32.cont [9/16] %v40_v16, 128  ;;  %63 = vxpose.xlu0.b32.cont [9/16] %v39_v17, 128 }
  0x38   :  { %96 = vxpose.xlu1.b32.cont [10/16] %v42_v18, 128  ;;  %64 = vxpose.xlu0.b32.cont [10/16] %v41_v19, 128 }
  0x3c   :  { %97 = vxpose.xlu1.b32.cont [11/16] %v44_v20, 128  ;;  %65 = vxpose.xlu0.b32.cont [11/16] %v43_v21, 128 }
  0x40   :  { %98 = vxpose.xlu1.b32.cont [12/16] %v46_v22, 128  ;;  %66 = vxpose.xlu0.b32.cont [12/16] %v45_v23, 128 }
  0x44   :  { %99 = vxpose.xlu1.b32.cont [13/16] %v48_v24, 128  ;;  %67 = vxpose.xlu0.b32.cont [13/16] %v47_v25, 128 }
  0x48   :  { %100 = vxpose.xlu1.b32.cont [14/16] %v50_v26, 128  ;;  %68 = vxpose.xlu0.b32.cont [14/16] %v49_v27, 128 }
  0x4c   :  { %101 = vxpose.xlu1.b32.cont [15/16] %v52_v28, 128  ;;  %69 = vxpose.xlu0.b32.cont [15/16] %v51_v29, 128 }
  0x50   :  { %102 = vxpose.xlu1.b32.end [16/16] %v54_v30, 128  ;;  %70 = vxpose.xlu0.b32.end [16/16] %v53_v31, 128 }
  0x94   :  { %v464_v32 = vpop.trf.xlu1  ;;  %v71_v33 = vpop.trf.xlu0 }
  0x98   :  { %v466_v34 = vpop.trf.xlu1  ;;  %v72_v35 = vpop.trf.xlu0 }
  0x99   :  { %v136_v46 = vmax.f32 %v466_v34, %v464_v32 }
  0x9c   :  { %v468_v36 = vpop.trf.xlu1  ;;  %v73_v37 = vpop.trf.xlu0 }
  0x9d   :  { %v138_v49 = vmax.f32 %v136_v46, %v468_v36  ;;  %v122_v57 = vmax.f32 %v71_v33, %v73_v37  ;;  %v189_v11 = vmax.f32 %v464_v32, %v468_v36 }
  0xa0   :  { %v470_v38 = vpop.trf.xlu1  ;;  %v74_v39 = vpop.trf.xlu0 }
  0xa1   :  { %v140_v52 = vmax.f32 %v138_v49, %v470_v38  ;;  %v123_v58 = vmax.f32 %v72_v35, %v74_v39  ;;  %v190_v13 = vmax.f32 %v466_v34, %v470_v38 }
  0xa4   :  { %v472_v40 = vpop.trf.xlu1  ;;  %v75_v41 = vpop.trf.xlu0 }
  0xa5   :  { %v142_v56 = vmax.f32 %v140_v52, %v472_v40  ;;  %v124_v60 = vmax.f32 %v122_v57, %v75_v41  ;;  %v191_v14 = vmax.f32 %v189_v11, %v472_v40 }
  0xa8   :  { %v474_v42 = vpop.trf.xlu1  ;;  %v76_v43 = vpop.trf.xlu0 }
  0xa9   :  { %v144_v59 = vmax.f32 %v142_v56, %v474_v42  ;;  %v125_v0 = vmax.f32 %v123_v58, %v76_v43  ;;  %v192_v20 = vmax.f32 %v190_v13, %v474_v42 }
  0xac   :  { %v476_v44 = vpop.trf.xlu1  ;;  %v77_v45 = vpop.trf.xlu0 }
  0xad   :  { %v146_v1 = vmax.f32 %v144_v59, %v476_v44  ;;  %v126_v2 = vmax.f32 %v124_v60, %v77_v45  ;;  %v193_v21 = vmax.f32 %v191_v14, %v476_v44 }
  0xb0   :  { %v480_v47 = vpop.trf.xlu1  ;;  %v78_v48 = vpop.trf.xlu0 }
  0xb1   :  { %v148_v4 = vmax.f32 %v146_v1, %v480_v47  ;;  %v127_v5 = vmax.f32 %v125_v0, %v78_v48  ;;  %v194_v25 = vmax.f32 %v192_v20, %v480_v47 }
  0xb4   :  { %v111_v50 = vpop.trf.xlu1  ;;  %v79_v51 = vpop.trf.xlu0 }
  0xb5   :  { %v128_v6 = vmax.f32 %v126_v2, %v79_v51  ;;  %v150_v9 = vmax.f32 %v148_v4, %v111_v50  ;;  %v195_v26 = vmax.f32 %v193_v21, %v111_v50  ;;  %v319_v33 = vmax.f32 %v476_v44, %v111_v50 }
  0xb7   :  { %v225_v15 = vsel %vm221_vm0, %v128_v6, -inf  ;;  %v241_v23 = vsel %vm235_vm2, %v128_v6, -inf }
  0xb8   :  { %v112_v54 = vpop.trf.xlu1  ;;  %v80_v55 = vpop.trf.xlu0  ;;  %v228_v22 = vrot.slane %v225_v15, 4 }
  0xb9   :  { %v129_v10 = vmax.f32 %v127_v5, %v80_v55  ;;  %v137_v12 = vmax.f32 %v112_v54, %v150_v9  ;;  %v196_v35 = vmax.f32 %v194_v25, %v112_v54  ;;  %v320_v37 = vmax.f32 %v480_v47, %v112_v54 }
  0xba   :  { %v229_v41 = vmax.f32 %v225_v15, %v228_v22 }
  0xbb   :  { %v242_v18 = vsel %vm238_vm1, %v129_v10, -inf  ;;  %v256_v43 = vsel %vm252_vm3, %v129_v10, -inf }
  0xbc   :  { %v113_v62 = vpop.trf.xlu1  ;;  %v81_v63 = vpop.trf.xlu0  ;;  %v243_v27 = vmax.f32 %v241_v23, %v242_v18  ;;  %v258_v50 = vrot.slane %v256_v43, 4 }
  0xbd   :  { %v139_v19 = vmax.f32 %v137_v12, %v113_v62  ;;  %v130_v30 = vmax.f32 %v128_v6, %v81_v63  ;;  %v197_v39 = vmax.f32 %v195_v26, %v113_v62  ;;  %v321_v49 = vmax.f32 %v319_v33, %v113_v62 }
  0xbe   :  { %v244_v48 = vrot.slane %v243_v27, 4 }
  0xc0   :  { %v114_v7 = vpop.trf.xlu1  ;;  %v493_v8 = vpop.trf.xlu0  ;;  %v245_v4 = vmax.f32 %v243_v27, %v244_v48 }
  0xc1   :  { %v141_v24 = vmax.f32 %v139_v19, %v114_v7  ;;  %v198_v56 = vmax.f32 %v196_v35, %v114_v7  ;;  %v322_v57 = vmax.f32 %v320_v37, %v114_v7  ;;  %v131_v47 = vmax.f32 %v129_v10, %v493_v8 }
  0xc2   :  { %v259_v19 = vmax.f32 %v256_v43, %v258_v50  ;;  %v246_v21 = vrot.slane %v245_v4, 2 }
  0xc4   :  { %v115_v16 = vpop.trf.xlu1  ;;  %v83_v17 = vpop.trf.xlu0  ;;  %v247_v35 = vmax.f32 %v245_v4, %v246_v21 }
  0xc5   :  { %v143_v31 = vmax.f32 %v141_v24, %v115_v16  ;;  %v132_v45 = vmax.f32 %v130_v30, %v83_v17  ;;  %v199_v51 = vmax.f32 %v197_v39, %v115_v16  ;;  %v280_v52 = vmax.f32 %v81_v63, %v83_v17 }
  0xc6   :  { %v323_v60 = vmax.f32 %v321_v49, %v115_v16  ;;  %v230_v17 = vrot.slane %v229_v41, 2  ;;  %v260_v30 = vrot.slane %v259_v19, 2 }
  0xc8   :  { %v116_v28 = vpop.trf.xlu1  ;;  %v513_v29 = vpop.trf.xlu0 }
  0xc9   :  { %v145_v46 = vmax.f32 %v143_v31, %v116_v28  ;;  %v200_v0 = vmax.f32 %v198_v56, %v116_v28  ;;  %v324_v1 = vmax.f32 %v322_v57, %v116_v28  ;;  %v133_v62 = vmax.f32 %v131_v47, %v513_v29 }
  0xca   :  { %v281_v43 = vmax.f32 %v493_v8, %v513_v29 }
  0xcc   :  { %v117_v53 = vpop.trf.xlu1  ;;  %v85_v55 = vpop.trf.xlu0 }
  0xcd   :  { %v147_v58 = vmax.f32 %v145_v46, %v117_v53  ;;  %v134_v44 = vmax.f32 %v132_v45, %v85_v55  ;;  %v201_v54 = vmax.f32 %v199_v51, %v117_v53  ;;  %v282_v59 = vmax.f32 %v280_v52, %v85_v55 }
  0xce   :  { %v325_v7 = vmax.f32 %v323_v60, %v117_v53  ;;  %v261_v53 = vmax.f32 %v259_v19, %v260_v30 }
  0xcf   :  { %v149_v2 = vmax.f32 %v147_v58, %v134_v44  ;;  %v168_v5 = vrot.slane %v134_v44, 4  ;;  %v284_v63 = vmax.f32 %v282_v59, %v464_v32  ;;  %v206_v14 = vrot.slane %v201_v54, 4 }
  0xd0   :  { %v118_v6 = vpop.trf.xlu1  ;;  %v86_v9 = vpop.trf.xlu0  ;;  %v327_v24 = vsel %vm221_vm0, %v325_v7, -inf  ;;  %v337_v27 = vsel %vm235_vm2, %v325_v7, -inf  ;;  %v248_v58 = vrot.slane %v247_v35, 1  ;;  %v262_v4 = vrot.slane %v261_v53, 1 }
  0xd1   :  { %v151_v11 = vmax.f32 %v149_v2, %v118_v6  ;;  %v202_v12 = vmax.f32 %v200_v0, %v118_v6  ;;  %v326_v13 = vmax.f32 %v324_v1, %v118_v6  ;;  %v169_v10 = vmax.f32 %v134_v44, %v168_v5 }
  0xd2   :  { %v286_v15 = vmax.f32 %v284_v63, %v468_v36  ;;  %v135_v16 = vmax.f32 %v133_v62, %v86_v9  ;;  %v207_v23 = vmax.f32 %v201_v54, %v206_v14  ;;  %v231_v36 = vmax.f32 %v229_v41, %v230_v17 }
  0xd3   :  { %v215_v18 = vrot.slane %v202_v12, 4  ;;  %v338_v32 = vsel %vm238_vm1, %v326_v13, -inf  ;;  %v170_v25 = vrot.slane %v169_v10, 2  ;;  %v348_v31 = vsel %vm252_vm3, %v326_v13, -inf }
  0xd4   :  { %v288_v20 = vmax.f32 %v286_v15, %v472_v40  ;;  %v152_v22 = vmax.f32 %v135_v16, %v151_v11  ;;  %v339_v40 = vmax.f32 %v337_v27, %v338_v32  ;;  %v330_v37 = vrot.slane %v327_v24, 4 }
  0xd5   :  { %v216_v28 = vmax.f32 %v202_v12, %v215_v18  ;;  %v208_v45 = vrot.slane %v207_v23, 2  ;;  %v171_v46 = vmax.f32 %v169_v10, %v170_v25  ;;  %v232_v48 = vrot.slane %v231_v36, 1 }
  0xd6   :  { %v290_v26 = vsel %vm221_vm0, %v288_v20, -inf  ;;  %v153_v33 = vrot.slane %v152_v22, 4  ;;  %v350_v51 = vrot.slane %v348_v31, 4  ;;  %v183_v52 = vrot.slane %v135_v16, 4 }
  0xd7   :  { %v293_v39 = vrot.slane %v290_v26, 4  ;;  %v217_v49 = vrot.slane %v216_v28, 2  ;;  %v340_v55 = vrot.slane %v339_v40, 4  ;;  %v283_v57 = vmax.f32 %v281_v43, %v86_v9 }
  0xd8   :  { %v154_v41 = vmax.f32 %v152_v22, %v153_v33  ;;  %v331_v44 = vmax.f32 %v327_v24, %v330_v37  ;;  %v184_v47 = vmax.f32 %v135_v16, %v183_v52  ;;  %v209_v54 = vmax.f32 %v207_v23, %v208_v45 }
  0xd9   :  { %v294_v50 = vmax.f32 %v290_v26, %v293_v39  ;;  %v172_v59 = vrot.slane %v171_v46, 1  ;;  %v285_v29 = vmax.f32 %v283_v57, %v466_v34  ;;  %v233_v60 = vmax.f32 %v231_v36, %v232_v48 }
  0xda   :  { %v155_v56 = vrot.slane %v154_v41, 2  ;;  %v218_v0 = vmax.f32 %v216_v28, %v217_v49  ;;  %v351_v1 = vmax.f32 %v348_v31, %v350_v51  ;;  %v185_v2 = vrot.slane %v184_v47, 2 }
  0xdb   :  { %v341_v62 = vmax.f32 %v339_v40, %v340_v55  ;;  %v287_v63 = vmax.f32 %v285_v29, %v470_v38  ;;  %v249_v6 = vmax.f32 %v247_v35, %v248_v58  ;;  %v332_v9 = vrot.slane %v331_v44, 2 }
  0xdc   :  { %v156_v8 = vmax.f32 %v154_v41, %v155_v56  ;;  %v295_v7 = vrot.slane %v294_v50, 2  ;;  %v186_v11 = vmax.f32 %v184_v47, %v185_v2  ;;  %v210_v12 = vrot.slane %v209_v54, 1 }
  0xdd   :  { %v173_v13 = vmax.f32 %v171_v46, %v172_v59  ;;  %v289_v14 = vmax.f32 %v287_v63, %v474_v42  ;;  %v300_v10 = vsel %vm235_vm2, %v288_v20, -inf  ;;  %v219_v15 = vrot.slane %v218_v0, 1 }
  0xde   :  { %v157_v5 = vrot.slane %v156_v8, 1  ;;  %v352_v16 = vrot.slane %v351_v1, 2  ;;  %v187_v17 = vrot.slane %v186_v11, 1  ;;  %v342_v18 = vrot.slane %v341_v62, 2 }
  0xdf   :  { %v301_v19 = vsel %vm238_vm1, %v289_v14, -inf  ;;  %v310_v21 = vsel %vm252_vm3, %v289_v14, -inf  ;;  %v296_v32 = vmax.f32 %v294_v50, %v295_v7  ;;  %v234_v42 = vmax.f32 %v233_v60, 0.0 }
  0xe0   :  { %v158_v34 = vmax.f32 %v156_v8, %v157_v5  ;;  %v188_v22 = vmax.f32 %v186_v11, %v187_v17  ;;  %v302_v23 = vmax.f32 %v300_v10, %v301_v19  ;;  %v312_v24 = vrot.slane %v310_v21, 4 }
  0xe1   :  { %v263_v25 = vmax.f32 %v261_v53, %v262_v4  ;;  %v211_v61 = vmax.f32 %v209_v54, %v210_v12  ;;  %v333_v20 = vmax.f32 %v331_v44, %v332_v9  ;;  %v220_v26 = vmax.f32 %v218_v0, %v219_v15 }
  0xe2   :  { %v266_v38 = vsel %vm265_vm4, %v158_v34, %v173_v13  ;;  %v303_v27 = vrot.slane %v302_v23, 4  ;;  %v313_v28 = vmax.f32 %v310_v21, %v312_v24  ;;  %v250_v30 = vmax.f32 %v249_v6, 0.0 }
  0xe3   :  { %v268_v36 = vsel %vm267_vm5, %v266_v38, %v188_v22  ;;  %v343_v40 = vmax.f32 %v341_v62, %v342_v18  ;;  %v353_v31 = vmax.f32 %v351_v1, %v352_v16  ;;  %v297_v3 = vrot.slane %v296_v32, 1 }
  0xe4   :  { %v270_v33 = vsel %vm269_vm6, %v268_v36, %v211_v61  ;;  %v304_v35 = vmax.f32 %v302_v23, %v303_v27  ;;  %v314_v37 = vrot.slane %v313_v28, 2  ;;  %v264_v43 = vmax.f32 %v263_v25, 0.0 }
  0xe5   :  { %v272_v39 = vsel %vm271_vm7, %v270_v33, %v220_v26  ;;  %v334_v46 = vrot.slane %v333_v20, 1  ;;  %v344_v51 = vrot.slane %v343_v40, 1  ;;  %v298_v53 = vmax.f32 %v296_v32, %v297_v3 }
  0xe6   :  { %v274_v45 = vsel %vm273_vm8, %v272_v39, %v234_v42  ;;  %v305_v41 = vrot.slane %v304_v35, 2  ;;  %v315_v48 = vmax.f32 %v313_v28, %v314_v37  ;;  %v354_v55 = vrot.slane %v353_v31, 1 }
  0xe7   :  { %v276_v49 = vsel %vm275_vm9, %v274_v45, %v250_v30  ;;  %v335_v58 = vmax.f32 %v333_v20, %v334_v46  ;;  %v345_v47 = vmax.f32 %v343_v40, %v344_v51  ;;  %v299_v54 = vmax.f32 %v298_v53, 0.0 }
  0xe8   :  { %v278_v52 = vsel %vm277_vm10, %v276_v49, %v264_v43  ;;  %v306_v56 = vmax.f32 %v304_v35, %v305_v41  ;;  %v316_v57 = vrot.slane %v315_v48, 1  ;;  %v355_v59 = vmax.f32 %v353_v31, %v354_v55 }
  0xe9   :  { %279 = vst [vmem:[#allocation5] sm:$0xff] %v278_v52  ;;  %v336_v60 = vmax.f32 %v335_v58, 0.0  ;;  %v346_v1 = vmax.f32 %v345_v47, 0.0 }
  0xea   :  { %v307_v44 = vrot.slane %v306_v56, 1  ;;  %v317_v50 = vmax.f32 %v315_v48, %v316_v57  ;;  %v356_v4 = vmax.f32 %v355_v59, 0.0 }
  0xec   :  { %v308_v8 = vmax.f32 %v306_v56, %v307_v44  ;;  %v318_v29 = vmax.f32 %v317_v50, 0.0 }
  0xee   :  { %v357_v0 = vsel %vm265_vm4, %v299_v54, %v308_v8 }
  0xef   :  { %v358_v2 = vsel %vm267_vm5, %v357_v0, %v318_v29 }
  0xf0   :  { %v359_v62 = vsel %vm269_vm6, %v358_v2, %v336_v60 }
  0xf1   :  { %v360_v5 = vsel %vm271_vm7, %v359_v62, %v346_v1 }
  0xf2   :  { %v361_v63 = vsel %vm273_vm8, %v360_v5, %v356_v4 }
  0xf3   :  { %v362_v6 = vsel %vm275_vm9, %v361_v63, 0.0 }
  0xf4   :  { %v363_v9 = vsel %vm277_vm10, %v362_v6, 0.0 }
  0xf5   :  { %364 = vst [vmem:[#allocation5 + $0x8] sm:$0xff] %v363_v9 }
  0xf6   :  { %421 = shalt.err (!%p418_p12)
}
  0xf7   :  { %s422_s24 = scalar_lea.hbm %s572_s1, 256 }
  0xf8   :  { %p423_p13 = scmp.ne.s32.totalorder %s572_s1, %s422_s24  ;;  %p426_p0 = scmp.lt.u32.totalorder %s422_s24, %s572_s1 }
  0xfa   :  { %p428_p1 = pnand %p426_p0, %p423_p13 }
  0xfc   :  { %431 = shalt.err (!%p428_p1)
}
  0xfd   :  { %s440_s29 = smov 128   ;;  %s441_s30 = smov 8  }
  0xfe   :  { %376 = dma.vmem_to_hbm [thread:$0]  %s371_s20, 256, %s572_s1, [#allocation4], %s440_s29, %s440_s29, %s441_s30  }
  0xff   :  { %434 = dma.done.wait [#allocation4], 256  }
 0x100   :  { %435 = vsyncadd [#allocation4], 4294967040 }
 0x101   :  { %380 = vsyncpa [#allocation3], 1 }
 0x102   :  { %381 = vsyncpa [#allocation4], 1 }

</bundles_post_ra>
